<compile_context>
chip_gen: v7x
topology: tpu7x:2x2x1
jax: 0.10.0
libtpu: 0.0.40
codegen_flags: <defaults>
</compile_context>

<pallas_src>
import jax
import jax.numpy as jnp
from jax import lax
from jax.experimental import pallas as pl
from jax.experimental.pallas import tpu as pltpu

EPS = 1e-5  # nn.GroupNorm default


def _round_up(x, m):
    return (x + m - 1) // m * m


def _pick_tile(hw_pad, c, cout, itemsize, target_lanes):
    """Largest multiple-of-128 lane tile <= target_lanes that divides hw_pad and
    keeps the double-buffered input+output tiles within a conservative VMEM
    budget (fits the scoped-VMEM limit on v5e/v6e/v7x with headroom)."""
    budget = 16 * 1024 * 1024
    best = 128
    t = 128
    while t <= min(hw_pad, target_lanes):
        if hw_pad % t == 0 and 2 * 2 * (c + cout) * t * itemsize <= budget:
            best = t
        t += 128
    return best


def prenorm_conv_kernel(invstd_ref, x_ref, w_ref, bfold_ref, o_ref):
    """One (batch b, spatial tile t) grid step.

    invstd_ref: (B,) f32 in SMEM        per-sample 1/sqrt(var + eps)
    x_ref:      (1, C, T)  activation tile (input dtype)
    w_ref:      (Cout, C)  gamma-folded 1x1 conv weight (resident across grid)
    bfold_ref:  (1, Cout, 1) f32 per-sample folded bias
                  = conv_w @ beta + conv_b - inv_std * mean * rowsum(W_g)
    o_ref:      (1, Cout, T)
    """
    b = pl.program_id(0)
    inv_std = invstd_ref[b]

    # Folded 1x1 conv on the MXU with f32 accumulation (no centering pass:
    # the mean term is folded into the bias).
    y = jnp.dot(w_ref[...], x_ref[0], preferred_element_type=jnp.float32)  # (Cout, T)

    # f32 epilogue: per-sample scale + folded per-sample bias, single cast.
    o_ref[0] = (y * inv_std + bfold_ref[0]).astype(o_ref.dtype)


def pre_normalization(x, gamma, beta, conv_w, conv_b, *, target_lanes=1024):
    """x: [B, C, H, W] (NCHW). Returns [B, Cout, H, W]."""
    B, C, H, W = x.shape
    Cout = conv_w.shape[0]
    HW = H * W
    dtype = x.dtype

    # ---- stats pass: one-pass moments with f32 accumulation (pure-JAX
    # reduction; one HBM read of the slab).
    n = C * HW
    s = jnp.sum(x, axis=(1, 2, 3), dtype=jnp.float32)                       # (B,)
    sq = jnp.sum(jnp.square(x.astype(jnp.float32)), axis=(1, 2, 3))          # (B,)
    mean = s / n
    var = jnp.maximum(sq / n - mean * mean, 0.0)      # guard against cancellation
    inv_std = lax.rsqrt(var + EPS)                    # (B,) f32 -> SMEM table

    # ---- fold the GroupNorm affine into the 1x1-conv weight / bias (tiny),
    # and fold the per-sample centering term into a per-sample bias.
    w2d = conv_w.reshape(Cout, C).astype(jnp.float32)
    w_g_f32 = w2d * gamma.astype(jnp.float32)[None, :]                       # (Cout, C)
    w_g = w_g_f32.astype(dtype)
    b_eff = w2d @ beta.astype(jnp.float32) + conv_b.astype(jnp.float32)      # (Cout,)
    row_sum = w_g_f32.sum(axis=1)                                            # (Cout,)
    # b_fold[b, o] = b_eff[o] - inv_std[b] * mean[b] * row_sum[o]
    b_fold = (b_eff[None, :]
              - (inv_std * mean)[:, None] * row_sum[None, :])                # (B, Cout)
    b_fold = b_fold.reshape(B, Cout, 1)                                      # f32

    # ---- spatial tiling (pad HW up to a lane-friendly multiple if ragged).
    x_flat = x.reshape(B, C, HW)
    hw_pad = _round_up(HW, 128)
    tile = _pick_tile(hw_pad, C, Cout, dtype.itemsize, target_lanes)
    hw_pad = _round_up(hw_pad, tile)
    if hw_pad != HW:
        # Zero lanes are excluded from stats (computed above on the raw x) and
        # the junk they produce in the output is sliced off below.
        x_flat = jnp.pad(x_flat, ((0, 0), (0, 0), (0, hw_pad - HW)))
    n_tiles = hw_pad // tile

    out = pl.pallas_call(
        prenorm_conv_kernel,
        out_shape=jax.ShapeDtypeStruct((B, Cout, hw_pad), dtype),
        grid_spec=pltpu.PrefetchScalarGridSpec(
            num_scalar_prefetch=0,
            grid=(B, n_tiles),
            in_specs=[
                # per-sample inv_std, whole table in SMEM
                pl.BlockSpec(memory_space=pltpu.MemorySpace.SMEM),
                # activation tile: (1, C, T), T a multiple of 128
                pl.BlockSpec((1, C, tile), lambda b, t: (b, 0, t)),
                # folded weight: constant index map -> stays resident
                pl.BlockSpec((Cout, C), lambda b, t: (0, 0)),
                # per-sample folded bias: resident across spatial tiles
                pl.BlockSpec((1, Cout, 1), lambda b, t: (b, 0, 0)),
            ],
            out_specs=pl.BlockSpec((1, Cout, tile), lambda b, t: (b, 0, t)),
        ),
        compiler_params=pltpu.CompilerParams(
            # reduction-free kernel: both axes parallel (uses both v7x TCs)
            dimension_semantics=("parallel", "parallel"),
            vmem_limit_bytes=32 * 1024 * 1024,
        ),
    )(inv_std, x_flat, w_g, b_fold)

    if hw_pad != HW:
        out = out[:, :, :HW]
    return out.reshape(B, Cout, H, W)


def reference(x, gamma, beta, conv_w, conv_b):
    B, C, H, W = x.shape
    Cout = conv_w.shape[0]
    xf = x.reshape(B, -1).astype(jnp.float32)
    mean = xf.mean(axis=1, keepdims=True)
    var = ((xf - mean) ** 2).mean(axis=1, keepdims=True)
    xn = ((xf - mean) / jnp.sqrt(var + EPS)).reshape(B, C, H, W)
    xn = xn * gamma[None, :, None, None] + beta[None, :, None, None]
    y = jnp.einsum("oc,bchw->bohw", conv_w.reshape(Cout, C), xn)
    return y + conv_b[None, :, None, None]


if __name__ == "__main__":
    key = jax.random.PRNGKey(0)

    # --- test 1: canonical small shape (Cout == C), single spatial tile ---
    B, C, H, W = 2, 4, 16, 16
    kx, kg, kb, kw, kcb, key = jax.random.split(key, 6)
    x = jax.random.normal(kx, (B, C, H, W), dtype=jnp.float32)
    gamma = jnp.ones((C,), jnp.float32) + 0.1 * jax.random.normal(kg, (C,), jnp.float32)
    beta = 0.1 * jax.random.normal(kb, (C,), jnp.float32)
    conv_w = jax.random.normal(kw, (C, C, 1, 1), dtype=jnp.float32) * 0.1
    conv_b = 0.1 * jax.random.normal(kcb, (C,), jnp.float32)

    out = jax.block_until_ready(pre_normalization(x, gamma, beta, conv_w, conv_b))
    ref = reference(x, gamma, beta, conv_w, conv_b)
    assert out.shape == (B, conv_w.shape[0], H, W)
    assert jnp.allclose(out, ref, atol=1e-4, rtol=1e-4), "mismatch vs reference (test 1)"

    # --- test 2: Cout != C, ragged HW (lane padding) and a multi-tile grid ---
    B2, C2, Cout2, H2, W2 = 2, 8, 16, 24, 24
    kx, kg, kb, kw, kcb, key = jax.random.split(key, 6)
    x2 = jax.random.normal(kx, (B2, C2, H2, W2), dtype=jnp.float32)
    gamma2 = jnp.ones((C2,), jnp.float32) + 0.1 * jax.random.normal(kg, (C2,), jnp.float32)
    beta2 = 0.1 * jax.random.normal(kb, (C2,), jnp.float32)
    conv_w2 = jax.random.normal(kw, (Cout2, C2, 1, 1), dtype=jnp.float32) * 0.1
    conv_b2 = 0.1 * jax.random.normal(kcb, (Cout2,), jnp.float32)

    out2 = jax.block_until_ready(
        pre_normalization(x2, gamma2, beta2, conv_w2, conv_b2, target_lanes=128))
    ref2 = reference(x2, gamma2, beta2, conv_w2, conv_b2)
    assert out2.shape == (B2, Cout2, H2, W2)
    assert jnp.allclose(out2, ref2, atol=1e-4, rtol=1e-4), "mismatch vs reference (test 2)"

    print("KERNEL_OK")
</pallas_src>

<mosaic_0001>
module attributes {stable_mosaic.version = 11 : i64} {
  func.func @prenorm_conv_kernel(%arg0: i32, %arg1: i32, %arg2: memref<2xf32, #tpu.memory_space<smem>>, %arg3: memref<1x4x256xf32, #tpu.memory_space<vmem>>, %arg4: memref<4x4xf32, #tpu.memory_space<vmem>>, %arg5: memref<1x4x1xf32, #tpu.memory_space<vmem>>, %arg6: memref<1x4x256xf32, #tpu.memory_space<vmem>>) attributes {dimension_semantics = [#tpu.dimension_semantics<parallel>, #tpu.dimension_semantics<parallel>], iteration_bounds = array<i64: 2, 1>, scalar_prefetch = 0 : i64, scratch_operands = 0 : i64, tpu.core_type = #tpu.core_type<tc>, window_params = [{transform_indices = @transform_0, window_bounds = array<i64: 2>}, {transform_indices = @transform_1, window_bounds = array<i64: 1, 4, 256>}, {pipeline_mode = #tpu.pipeline_mode<synchronous>, transform_indices = @transform_2, window_bounds = array<i64: 4, 4>}, {transform_indices = @transform_3, window_bounds = array<i64: 1, 4, 1>}, {transform_indices = @transform_4, window_bounds = array<i64: 1, 4, 256>}]} {
    %0 = arith.index_cast %arg0 : i32 to index
    %1 = memref.load %arg2[%0] : memref<2xf32, #tpu.memory_space<smem>>
    %c0 = arith.constant 0 : index
    %c0_0 = arith.constant 0 : index
    %2 = vector.load %arg4[%c0, %c0_0] : memref<4x4xf32, #tpu.memory_space<vmem>>, vector<4x4xf32>
    %c0_1 = arith.constant 0 : index
    %c0_2 = arith.constant 0 : index
    %c0_3 = arith.constant 0 : index
    %3 = vector.load %arg3[%c0_1, %c0_2, %c0_3] : memref<1x4x256xf32, #tpu.memory_space<vmem>>, vector<1x4x256xf32>
    %4 = vector.shape_cast %3 : vector<1x4x256xf32> to vector<4x256xf32>
    %cst = arith.constant dense<0.000000e+00> : vector<4x256xf32>
    %5 = tpu.matmul %2, %4, %cst {dimension_numbers = #tpu.dot_dimension_numbers<[1], [0], [0], [1], [0, 0, 1, 1], [], []>} : vector<4x4xf32>, vector<4x256xf32>, vector<4x256xf32> -> vector<4x256xf32>
    %6 = vector.broadcast %1 : f32 to vector<4x256xf32>
    %7 = arith.mulf %5, %6 : vector<4x256xf32>
    %c0_4 = arith.constant 0 : index
    %c0_5 = arith.constant 0 : index
    %c0_6 = arith.constant 0 : index
    %8 = vector.load %arg5[%c0_4, %c0_5, %c0_6] : memref<1x4x1xf32, #tpu.memory_space<vmem>>, vector<1x4x1xf32>
    %9 = vector.shape_cast %8 : vector<1x4x1xf32> to vector<4x1xf32>
    %10 = vector.broadcast %9 : vector<4x1xf32> to vector<4x256xf32>
    %11 = arith.addf %7, %10 : vector<4x256xf32>
    %c0_7 = arith.constant 0 : index
    %c0_8 = arith.constant 0 : index
    %c0_9 = arith.constant 0 : index
    %12 = vector.load %arg6[%c0_7, %c0_8, %c0_9] : memref<1x4x256xf32, #tpu.memory_space<vmem>>, vector<1x4x256xf32>
    %13 = vector.shape_cast %12 : vector<1x4x256xf32> to vector<4x256xf32>
    %14 = vector.shape_cast %11 : vector<4x256xf32> to vector<1x4x256xf32>
    tpu.vector_store %arg6[%c0_7, %c0_8, %c0_9], %14 {strides = array<i32>} : memref<1x4x256xf32, #tpu.memory_space<vmem>>, vector<1x4x256xf32>,
    return
  }
  func.func @transform_0(%arg0: i32, %arg1: i32) -> i32 {
    %c0_i32 = arith.constant 0 : i32
    %c0_i32_0 = arith.constant 0 : i32
    return %c0_i32 : i32
  }
  func.func @transform_1(%arg0: i32, %arg1: i32) -> (i32, i32, i32) {
    %c0_i32 = arith.constant 0 : i32
    %c0_i32_0 = arith.constant 0 : i32
    return %arg0, %c0_i32, %arg1 : i32, i32, i32
  }
  func.func @transform_2(%arg0: i32, %arg1: i32) -> (i32, i32) {
    %c0_i32 = arith.constant 0 : i32
    %c0_i32_0 = arith.constant 0 : i32
    %c0_i32_1 = arith.constant 0 : i32
    return %c0_i32, %c0_i32_0 : i32, i32
  }
  func.func @transform_3(%arg0: i32, %arg1: i32) -> (i32, i32, i32) {
    %c0_i32 = arith.constant 0 : i32
    %c0_i32_0 = arith.constant 0 : i32
    %c0_i32_1 = arith.constant 0 : i32
    return %arg0, %c0_i32, %c0_i32_0 : i32, i32, i32
  }
  func.func @transform_4(%arg0: i32, %arg1: i32) -> (i32, i32, i32) {
    %c0_i32 = arith.constant 0 : i32
    %c0_i32_0 = arith.constant 0 : i32
    return %arg0, %c0_i32, %arg1 : i32, i32, i32
  }
}

</mosaic_0001>

<bundles_post_ra>
// kernel: tpu_custom_call.1
= control target key start
LH: loop header
LB: loop body
LE: loop exit
PB: predicated region body
PF: predicated region fallthrough
CT: control target
= control target key end

     0   :  { %9 = vsyncpa [#allocation5], 0  ;;  %s966_s0 = inlined_call_operand.vmem [shape: f32[2], index: 0, kind: input, shape index: {}]   ;;  %s967_s1 = inlined_call_operand.hbm [shape: f32[2,4,256], index: 1, kind: input, shape index: {}]   ;;  %s968_s2 = inlined_call_operand.vmem [shape: f32[4,4], index: 2, kind: input, shape index: {}]   ;;  %s969_s3 = inlined_call_operand.vmem [shape: f32[2,4,1], index: 3, kind: input, shape index: {}]   ;;  %s970_s4 = inlined_call_operand.hbm [shape: f32[2,4,256], index: 4, kind: output, shape index: {}]  }
   0x1   :  { %10 = vsyncpa [#allocation3], 0 }
   0x2   :  { %12 = vsyncpa [#allocation3 + $0x1], 0 }
   0x3   :  { %13 = vsyncpa [#allocation4], 0 }
   0x4   :  { %15 = vsyncpa [#allocation4 + $0x1], 0  ;;  %s754_s15 = smov 0   ;;  %s756_s16 = smov 0  }
   0x5   :  { %s758_s17 = smov 0   ;;  %s760_s18 = smov 0  }
   0x6   :  { %s762_s19 = smov 0   ;;  %s764_s20 = smov 0  }
   0x7 LB: > { %s491_s21 = sadd.s32 4294967295, %s722_s20   ;;  %s492_s22 = sadd.s32 4294967294, %s722_s20   ;;  %s722_s20 = sphi %s764_s20, %s21_s20   ;;  %s718_s19 = sphi %s762_s19, %s992_s19   ;;  %s714_s18 = sphi %s760_s18, %s991_s18   ;;  %s710_s17 = sphi %s758_s17, %s990_s17   ;;  %s706_s16 = sphi %s756_s16, %s989_s16   ;;  %s702_s15 = sphi %s754_s15, %s988_s15  }
   0x8   : > { %p76_p0 = scmp.ne.s32.totalorder %s706_s16, %s702_s15  ;;  %p788_p1 = scmp.eq.s32.totalorder %s491_s21, 0 }
   0x9   : > { %p792_p2 = scmp.eq.s32.totalorder %s491_s21, 1  ;;  %p155_p3 = scmp.eq.s32.totalorder %s492_s22, 1 }
   0xa   : > { %s975_s23 = scalar_select %p788_p1, 1, 0 }
   0xb   : > { %p798_p4 = por %p788_p1, %p76_p0  ;;  %p493_p5 = scmp.ge.s32.totalorder %s722_s20, 1 }
   0xc   : > { %p803_p6 = por %p155_p3, %p76_p0  ;;  %p162_p7 = scmp.lt.s32.totalorder %s722_s20, 3 }
   0xd   : > { %s977_s25 = scalar_select %p798_p4, 1, 0 }
   0xe   : > { %s978_s26 = scalar_select %p803_p6, 1, 0 }
   0xf   : > { %s175_s29 = sshll.u32 %s966_s0, 4  ;;  %p811_p8 = pnand %p493_p5, %p162_p7  ;;  %s176_s29 = int_to_ptr.vmem [resolvable:$true] %s175_s29 }
  0x10   : > { %s33_s6 = sadd.s32 1, %s718_s19  ;;  %s63_s7 = sadd.s32 1, %s710_s17 }
  0x11   : > { %p522_p10 = pneg %p811_p8  ;;  %p35_p12 = scmp.ge.s32.totalorder %s33_s6, 2 }
  0x12   : > { %s591_s8 = scalar_lea.vmem %s176_s29, 16  ;;  %p599_p7 = scmp.lt.s32.totalorder %s176_s29, %s176_s29 }
  0x13   : > { %p820_p11 = pnand %p522_p10, %p788_p1  ;;  %p592_p13 = scmp.ne.s32.totalorder %s176_s29, %s591_s8 }
  0x14   : > { %p600_p6 = scmp.lt.s32.totalorder %s591_s8, %s591_s8 }
  0x15   : > { %p593_p0 = pneg %p820_p11 }
  0x16   : > { %p601_p9 = por %p600_p6, %p599_p7 }
  0x17   : > { %p594_p3 = pnand %p593_p0, %p592_p13 }
  0x19   : > { %p595_p5 = pneg %p594_p3 }
  0x1b   : > { %p602_p4 = pnand %p601_p9, %p595_p5 }
  0x1d   : > { %605 = shalt.err (!%p602_p4)
}
  0x1e   : > { %s724_s9 = smov [#allocation2]   ;;  %s994_s6 = smov (%p35_p12, %s33_s6), 0 }
  0x1f   : > { %525 = dma.vmem_to_smem (!%p820_p11), %s176_s29, 16, %s724_s9, [#allocation5]  }
  0x20   : > { %p70_p10 = scmp.ne.s32.totalorder %s710_s17, %s706_s16  ;;  %p71_p6 = scmp.eq.s32.totalorder %s722_s20, 0 }
  0x21   : > { %s58_s10 = ssub.s32 %s718_s19, %s994_s6  ;;  %p535_p4 = scmp.lt.s32.totalorder %s722_s20, 2 }
  0x22   : > { %p61_p9 = scmp.eq.s32.totalorder %s58_s10, 0  ;;  %p72_p13 = por %p71_p6, %p70_p10 }
  0x23   : > { %p840_p0 = por %p792_p2, %p70_p10  ;;  %s189_s12 = sand.u32 1, %s710_s17  }
  0x24   : > { %s846_s13 = scalar_select %p61_p9, %s710_s17, %s63_s7  }
  0x25   : > { %s981_s11 = scalar_select %p840_p0, 1, 0 }
  0x26   : > { %s496_s14 = sshll.u32 %s189_s12, 3  ;;  %s512_s21 = sshll.u32 %s718_s19, 7 }
  0x27   : > { %s852_s28 = scalar_lea.hbm %s967_s1, %s512_s21  ;;  %s193_s29 = scalar_lea.vmem [#allocation6], %s496_s14 }
  0x28   : > { %s203_s24 = sshll.u32 %s193_s29, 4  ;;  %p856_p2 = pnand %p535_p4, %p72_p13  ;;  %s854_s24 = int_to_ptr.vmem [resolvable:$true] %s203_s24 }
  0x29   : > { %s190_s7 = scalar_lea.sflag [#allocation3], %s189_s12  ;;  %s606_s8 = scalar_lea.hbm %s852_s28, 128 }
  0x2a   : > { %p607_p11 = scmp.ne.s32.totalorder %s852_s28, %s606_s8  ;;  %p608_p12 = pneg %p856_p2 }
  0x2b   : > { %s611_s14 = scalar_lea.hbm %s967_s1, 256  ;;  %p612_p7 = scmp.lt.u32.totalorder %s852_s28, %s967_s1 }
  0x2c   : > { %p609_p3 = pnand %p608_p12, %p607_p11  ;;  %p613_p10 = scmp.lt.u32.totalorder %s611_s14, %s606_s8 }
  0x2d   : > { %p615_p4 = scmp.lt.u32.totalorder %s606_s8, %s852_s28 }
  0x2e   : > { %p610_p5 = pneg %p609_p3  ;;  %p614_p6 = por %p613_p10, %p612_p7 }
  0x30   : > { %p616_p9 = por %p615_p4, %p614_p6 }
  0x32   : > { %p617_p13 = pnand %p616_p9, %p610_p5 }
  0x34   : > { %620 = shalt.err (!%p617_p13)
}
  0x35   : > { %s621_s12 = scalar_lea.vmem %s854_s24, 128  ;;  %s725_s27 = smov [#allocation6]  }
  0x36   : > { %p622_p11 = scmp.ne.s32.totalorder %s854_s24, %s621_s12  ;;  %s626_s29 = sshll.u32 %s725_s27, 4  ;;  %s627_s29 = int_to_ptr.vmem [resolvable:$false] %s626_s29 }
  0x37   : > { %s628_s9 = scalar_lea.vmem %s627_s29, 256  ;;  %p629_p1 = scmp.lt.s32.totalorder %s854_s24, %s627_s29 }
  0x38   : > { %p624_p3 = pnand %p622_p11, %p608_p12  ;;  %p630_p7 = scmp.lt.s32.totalorder %s628_s9, %s621_s12 }
  0x3a   : > { %p625_p0 = pneg %p624_p3  ;;  %p631_p10 = por %p630_p7, %p629_p1 }
  0x3c   : > { %p632_p6 = pnand %p631_p10, %p625_p0 }
  0x3e   : > { %635 = shalt.err (!%p632_p6)
}
  0x3f   : > { %529 = dma.hbm_to_vmem [thread:$0]  (!%p856_p2), %s852_s28, 128, %s854_s24, %s190_s7  }
  0x40   : > { %219 = sbr.rel (%p811_p8) target bundleno = 316 (0x13c), region = 36  ;;  %p983_p12 = scmp.ne.s32.totalorder (!%p811_p8), %s975_s23, 0 }
  0x47   : > { %689 = dma.done.wait (%p983_p12), [#allocation5], 16  }
  0x48   : > { %691 = vsyncadd (%p983_p12), [#allocation5], 4294967280  ;;  %s892_s8 = sand.u32 1, %s706_s16   ;;  %p984_p1 = scmp.ne.s32.totalorder %s977_s25, 0 }
  0x49   : > { %s501_s5 = sshll.u32 %s892_s8, 3  ;;  %s226_s10 = scalar_lea.sflag [#allocation3], %s892_s8 }
  0x4a   : > { %s229_s28 = scalar_lea.vmem [#allocation6], %s501_s5 }
  0x4b   : > { %693 = dma.done.wait (%p984_p1), %s226_s10, 128  }
  0x4c   : > { %695 = vsyncadd (%p984_p1), %s226_s10, 4294967168 }
  0x4d   : > { %234 = sfence }
  0x4e   : > { %v267_v0 = vld [vmem:[%s229_s28] sm:$0xff]  ;;  %vm274_vm0 = vcmask 1043456   ;;  %v726_v2 = vmov 0.0   ;;  %p260_p8 = scmp.lt.s32.totalorder %s714_s18, 1  ;;  %vm270_vm1 = vcmask 31744   ;;  %v727_v4 = vmov 0  }
  0x4f   : > { %v269_v1 = vcombine.high %v267_v0, %v267_v0  ;;  %343 = vmatprep.mubr.f32.mxu0 %v726_v2  ;;  %v266_v3 = vld [vmem:[%s968_s2] sm:$0xf]  ;;  %589 = vset.pattern.permute.xlu0 %v727_v4  ;;  %s265_s22 = sld [smem:[#allocation2 + %s714_s18]]  ;;  %s513_s12 = sshll.u32 %s714_s18, 7 }
  0x50   : > { %s261_s25 = scalar_select %p260_p8, %s714_s18, 1 }
  0x51   : > { %504 = vmatprep.subr.msk.mxu0 %vm274_vm0, %v269_v1  ;;  %s258_s27 = scalar_lea.vmem [#allocation7], %s501_s5  ;;  %s917_s28 = scalar_lea.hbm %s970_s4, %s513_s12 }
  0x52   : > { %505 = vmatpush1.msk.msra.mxu0 %vm274_vm0, %v267_v0  ;;  %s503_s24 = sshll.u32 %s261_s25, 2  ;;  %s383_s29 = sshll.u32 %s258_s27, 4  ;;  %s919_s29 = int_to_ptr.vmem [resolvable:$true] %s383_s29 }
  0x53   : > { %506 = vmatmul.mubr.msk.f32.vlgmr.msra.gmra.mrb[0].mxu0 %vm270_vm1, %v266_v3  ;;  %s263_s21 = scalar_lea.vmem %s969_s3, %s503_s24  ;;  %s367_s23 = scalar_lea.sflag [#allocation4], %s892_s8 }
  0x54   : > { %v353_v5 = vld [vmem:[%s263_s21] sm:$0xf]  ;;  %s636_s30 = scalar_lea.vmem %s919_s29, 128  ;;  %p985_p2 = scmp.ne.s32.totalorder %s981_s11, 0 }
  0x55   : > { %356 = vperm.xlu0 %589, %v353_v5   ;;  %v350_v6 = vstv %s265_s22  ;;  %p637_p0 = scmp.ne.s32.totalorder %s919_s29, %s636_s30  ;;  %s728_s18 = smov [#allocation7]  }
  0x56   : > { %s640_s5 = sshll.u32 %s728_s18, 4  ;;  %s641_s5 = int_to_ptr.vmem [resolvable:$false] %s640_s5 }
  0x57   : > { %p638_p5 = pnand %p637_p0, %p985_p2  ;;  %s642_s25 = scalar_lea.vmem %s641_s5, 256 }
  0x58   : > { %p643_p9 = scmp.lt.s32.totalorder %s919_s29, %s641_s5  ;;  %p644_p13 = scmp.lt.s32.totalorder %s642_s25, %s636_s30 }
  0x59   : > { %p639_p4 = pneg %p638_p5 }
  0x5a   : > { %p645_p11 = por %p644_p13, %p643_p9 }
  0x5c   : > { %p646_p3 = pnand %p645_p11, %p639_p4 }
  0xd4   : > { %v357_v8 = vpop.permute.xlu0 %356 }
 0x126   : > { %v345_v7 = vpop.f32.mrb[0].mxu0 }
 0x127   : > { %v351_v9 = vmul.f32 %v350_v6, %v345_v7  ;;  %v347_v10 = vpop.f32.mrb[1].mxu0 }
 0x128   : > { %v352_v11 = vmul.f32 %v350_v6, %v347_v10 }
 0x129   : > { %v359_v12 = vadd.f32 %v357_v8, %v351_v9 }
 0x12a   : > { %v360_v13 = vadd.f32 %v357_v8, %v352_v11 }
 0x12c   : > { %v363_v14 = vcombine.low %v359_v12, %v360_v13 }
 0x12e   : > { %365 = vst [vmem:[%s258_s27] sm:$0xff] %v363_v14 }
 0x12f   : > { %649 = shalt.err (!%p646_p3)
}
 0x130   : > { %s650_s8 = scalar_lea.hbm %s917_s28, 128  ;;  %s654_s14 = scalar_lea.hbm %s970_s4, 256 }
 0x131   : > { %p651_p7 = scmp.ne.s32.totalorder %s917_s28, %s650_s8  ;;  %p655_p12 = scmp.lt.u32.totalorder %s917_s28, %s970_s4 }
 0x132   : > { %p656_p1 = scmp.lt.u32.totalorder %s654_s14, %s650_s8  ;;  %p658_p0 = scmp.lt.u32.totalorder %s650_s8, %s917_s28 }
 0x133   : > { %p652_p10 = pnand %p651_p7, %p985_p2 }
 0x134   : > { %p657_p8 = por %p656_p1, %p655_p12 }
 0x135   : > { %p653_p6 = pneg %p652_p10 }
 0x136   : > { %p659_p5 = por %p658_p0, %p657_p8 }
 0x138   : > { %p660_p4 = pnand %p659_p5, %p653_p6 }
 0x13a   : > { %663 = shalt.err (!%p660_p4)
}
 0x13b   : > { %520 = dma.vmem_to_hbm [thread:$0]  (%p985_p2), %s919_s29, 128, %s917_s28, %s367_s23  }
 0x13c PF: > { %s395_s12 = sand.u32 1, %s702_s15   ;;  %p986_p9 = scmp.ne.s32.totalorder %s978_s26, 0 }
 0x13d   : > { %p987_p13 = scmp.ge.s32.totalorder %s722_s20, 2  ;;  %s396_s27 = scalar_lea.sflag [#allocation4], %s395_s12 }
 0x13f   : > { %p531_p11 = pnand %p987_p13, %p986_p9 }
 0x141   : > { %697 = dma.done.wait (!%p531_p11), %s396_s27, 128  }
 0x142   : > { %699 = vsyncadd (!%p531_p11), %s396_s27, 4294967168  ;;  %s21_s20 = sadd.s32 1, %s722_s20   ;;  %s988_s15 = smov %s706_s16 }
 0x143   : > { %p18_p3 = scmp.ge.s32.totalorder %s21_s20, 4   ;;  %s989_s16 = smov %s710_s17 }
 0x144   : > { %s990_s17 = smov %s846_s13  ;;  %s991_s18 = smov %s718_s19 }
 0x145   : > { %s992_s19 = smov %s994_s6  ;;  %20 = sbr.rel (!%p18_p3) target bundleno = 7 (0x7), region = 89 }
 0x14c   :  { %401 = vsyncpa [#allocation3], 1 }
 0x14d   :  { %403 = vsyncpa [#allocation3 + $0x1], 1 }
 0x14e   :  { %404 = vsyncpa [#allocation4], 1 }
 0x14f   :  { %406 = vsyncpa [#allocation4 + $0x1], 1 }
 0x150   :  { %407 = vsyncpa [#allocation5], 1 }
 0x151   :  { %409 = vsyncpa [#allocation5 + $0x1], 1 }

</bundles_post_ra>
